<compile_context>
chip_gen: v7x
topology: tpu7x:2x2x1
jax: 0.10.0
libtpu: 0.0.40
codegen_flags: <defaults>
</compile_context>

<pallas_src>
import functools

import jax
import jax.numpy as jnp
from jax.experimental import pallas as pl
from jax.experimental.pallas import tpu as pltpu

_LANE = 128   # lane width (last dim)
_SUBLANE = 8  # sublane width (second-last dim)


def _round_up(n, m):
    return ((n + m - 1) // m) * m


def qnet_kernel(x_ref, w1_ref, b1_ref, w2_ref, b2_ref, o_ref):
    # Fused two-layer MLP on one batch tile: matmul -> bias -> ReLU -> matmul
    # -> bias. Weights are resident (constant index_map); everything stays in
    # f32 vregs between the two MXU pushes.
    x = x_ref[...]
    h = jnp.dot(x, w1_ref[...], preferred_element_type=jnp.float32)
    h = jnp.maximum(h + b1_ref[...], 0.0)            # ReLU
    y = jnp.dot(h, w2_ref[...], preferred_element_type=jnp.float32)
    o_ref[...] = (y + b2_ref[...]).astype(o_ref.dtype)


def pad_params(w1, b1, w2, b2, dtype=jnp.float32):
    """Pad parameters ONCE at init time (not per forward call).

    Only the output-feature dim is padded to a lane multiple (128) so the
    kernel's output store is full-width. Hidden stays unpadded: block shapes
    equal to the full array dims are legal and avoid 4x MXU/VMEM inflation.

    w1: (in, hidden)   = linear1.weight.T
    b1: (hidden,)      = linear1.bias
    w2: (hidden, out)  = linear2.weight.T
    b2: (out,)         = linear2.bias
    """
    in_size, hidden = w1.shape
    out_size = w2.shape[1]
    out_p = _round_up(out_size, _LANE)
    # Explicit weight-dtype policy: keep weights in f32 regardless of x dtype.
    w1p = jnp.asarray(w1, dtype)                              # (in, hidden)
    b1p = jnp.asarray(b1, dtype).reshape(1, hidden)           # (1, hidden)
    w2p = jnp.zeros((hidden, out_p), dtype).at[:, :out_size].set(
        jnp.asarray(w2, dtype))                               # (hidden, out_p)
    b2p = jnp.zeros((1, out_p), dtype).at[0, :out_size].set(
        jnp.asarray(b2, dtype))                               # (1, out_p)
    return w1p, b1p, w2p, b2p


@functools.partial(jax.jit, static_argnames=("out_size", "max_batch_tile"))
def linear_qnet_forward(x, w1p, b1p, w2p, b2p, *, out_size, max_batch_tile=1024):
    """Forward pass of Linear_QNet on pre-padded parameters (see pad_params).

    x: (B, in) activations. Returns (B, out_size).
    """
    B, in_size = x.shape
    hidden = w1p.shape[1]
    out_p = w2p.shape[1]
    dt = x.dtype

    # One grid step for typical replay-batch sizes; tile only very large
    # batches. (On v7x, pass a smaller max_batch_tile to get an even grid that
    # can shard across the two TensorCores; for B<=1024 one tile is best.)
    B_p = _round_up(B, _SUBLANE)
    tb = B_p if B_p <= max_batch_tile else max_batch_tile
    B_p = _round_up(B_p, tb)
    grid = (B_p // tb,)

    # Skip the padding copy of x when the batch is already aligned.
    if B_p == B:
        xp = x
    else:
        xp = jnp.zeros((B_p, in_size), dt).at[:B, :].set(x)

    # Advisory cost estimate from logical (unpadded) sizes.
    itemsize = jnp.dtype(dt).itemsize
    flops = 2 * B * (in_size * hidden + hidden * out_size)
    bytes_accessed = itemsize * (
        B * in_size
        + in_size * hidden + hidden
        + hidden * out_size + out_size
        + B * out_size
    )

    out_padded = pl.pallas_call(
        qnet_kernel,
        out_shape=jax.ShapeDtypeStruct((B_p, out_p), dt),
        grid=grid,
        in_specs=[
            # x: one batch tile per grid step.
            pl.BlockSpec((tb, in_size), lambda i: (i, 0)),
            # Weights/biases: constant index_map -> resident in VMEM.
            pl.BlockSpec((in_size, hidden), lambda i: (0, 0)),
            pl.BlockSpec((1, hidden), lambda i: (0, 0)),
            pl.BlockSpec((hidden, out_p), lambda i: (0, 0)),
            pl.BlockSpec((1, out_p), lambda i: (0, 0)),
        ],
        out_specs=pl.BlockSpec((tb, out_p), lambda i: (i, 0)),
        compiler_params=pltpu.CompilerParams(
            dimension_semantics=("parallel",),  # batch tiles across TCs (v7x)
        ),
        cost_estimate=pl.CostEstimate(
            flops=flops, transcendentals=0, bytes_accessed=bytes_accessed
        ),
    )(xp, w1p, b1p, w2p, b2p)

    return out_padded[:B, :out_size]


def init_params(key, input_size, hidden_size, output_size, dtype=jnp.float32):
    """Deterministic init mimicking nn.Linear default: U(-1/sqrt(in), 1/sqrt(in))."""
    k1, k2, k3, k4 = jax.random.split(key, 4)
    bound1 = 1.0 / jnp.sqrt(input_size)
    bound2 = 1.0 / jnp.sqrt(hidden_size)
    # Stored as (in, out) == transpose of PyTorch's (out, in) weight layout.
    w1 = jax.random.uniform(k1, (input_size, hidden_size), dtype, -bound1, bound1)
    b1 = jax.random.uniform(k2, (hidden_size,), dtype, -bound1, bound1)
    w2 = jax.random.uniform(k3, (hidden_size, output_size), dtype, -bound2, bound2)
    b2 = jax.random.uniform(k4, (output_size,), dtype, -bound2, bound2)
    return w1, b1, w2, b2


def reference_forward(x, w1, b1, w2, b2):
    h = jnp.maximum(x @ w1 + b1, 0.0)
    return h @ w2 + b2


# TODO(synk): Linear_QNet.save()/load() are host-side torch state_dict file I/O
# with no kernel equivalent; not implemented.

if __name__ == "__main__":
    # Snake-game shapes: 11 state features, 32 hidden units, 3 actions.
    batch, input_size, hidden_size, output_size = 8, 11, 32, 3

    key = jax.random.PRNGKey(0)
    kx, kp = jax.random.split(key)
    x = jax.random.normal(kx, (batch, input_size), jnp.float32)
    w1, b1, w2, b2 = init_params(kp, input_size, hidden_size, output_size)

    # Pad parameters once at init; forward never re-pads them.
    w1p, b1p, w2p, b2p = pad_params(w1, b1, w2, b2)

    # Small aligned batch: single grid step, no x padding copy.
    out = jax.block_until_ready(
        linear_qnet_forward(x, w1p, b1p, w2p, b2p, out_size=output_size)
    )
    ref = reference_forward(x, w1, b1, w2, b2)
    assert out.shape == (batch, output_size)
    assert jnp.allclose(out, ref, atol=1e-5, rtol=1e-5)

    # Replay-buffer-sized batch: still a single grid step with defaults.
    xb = jax.random.normal(kx, (256, input_size), jnp.float32)
    outb = jax.block_until_ready(
        linear_qnet_forward(xb, w1p, b1p, w2p, b2p, out_size=output_size)
    )
    refb = reference_forward(xb, w1, b1, w2, b2)
    assert outb.shape == (256, output_size)
    assert jnp.allclose(outb, refb, atol=1e-5, rtol=1e-5)

    # Exercise the multi-tile grid path (forced small tile) and the ragged
    # (non-aligned) batch path.
    outm = jax.block_until_ready(
        linear_qnet_forward(xb, w1p, b1p, w2p, b2p,
                            out_size=output_size, max_batch_tile=128)
    )
    assert jnp.allclose(outm, refb, atol=1e-5, rtol=1e-5)

    xr = jax.random.normal(kx, (5, input_size), jnp.float32)
    outr = jax.block_until_ready(
        linear_qnet_forward(xr, w1p, b1p, w2p, b2p, out_size=output_size)
    )
    refr = reference_forward(xr, w1, b1, w2, b2)
    assert outr.shape == (5, output_size)
    assert jnp.allclose(outr, refr, atol=1e-5, rtol=1e-5)

    print("KERNEL_OK")
</pallas_src>

<mosaic_0001>
module attributes {stable_mosaic.version = 11 : i64} {
  func.func @qnet_kernel(%arg0: i32, %arg1: memref<8x11xf32, #tpu.memory_space<vmem>>, %arg2: memref<11x32xf32, #tpu.memory_space<vmem>>, %arg3: memref<1x32xf32, #tpu.memory_space<vmem>>, %arg4: memref<32x128xf32, #tpu.memory_space<vmem>>, %arg5: memref<1x128xf32, #tpu.memory_space<vmem>>, %arg6: memref<8x128xf32, #tpu.memory_space<vmem>>) attributes {dimension_semantics = [#tpu.dimension_semantics<parallel>], iteration_bounds = array<i64: 1>, scalar_prefetch = 0 : i64, scratch_operands = 0 : i64, tpu.core_type = #tpu.core_type<tc>, window_params = [{transform_indices = @transform_0, window_bounds = array<i64: 8, 11>}, {pipeline_mode = #tpu.pipeline_mode<synchronous>, transform_indices = @transform_1, window_bounds = array<i64: 11, 32>}, {pipeline_mode = #tpu.pipeline_mode<synchronous>, transform_indices = @transform_2, window_bounds = array<i64: 1, 32>}, {pipeline_mode = #tpu.pipeline_mode<synchronous>, transform_indices = @transform_3, window_bounds = array<i64: 32, 128>}, {pipeline_mode = #tpu.pipeline_mode<synchronous>, transform_indices = @transform_4, window_bounds = array<i64: 1, 128>}, {transform_indices = @transform_5, window_bounds = array<i64: 8, 128>}]} {
    %c0 = arith.constant 0 : index
    %c0_0 = arith.constant 0 : index
    %0 = vector.load %arg1[%c0, %c0_0] : memref<8x11xf32, #tpu.memory_space<vmem>>, vector<8x11xf32>
    %c0_1 = arith.constant 0 : index
    %c0_2 = arith.constant 0 : index
    %1 = vector.load %arg2[%c0_1, %c0_2] : memref<11x32xf32, #tpu.memory_space<vmem>>, vector<11x32xf32>
    %cst = arith.constant dense<0.000000e+00> : vector<8x32xf32>
    %2 = tpu.matmul %0, %1, %cst {dimension_numbers = #tpu.dot_dimension_numbers<[1], [0], [0], [1], [0, 0, 1, 1], [], []>} : vector<8x11xf32>, vector<11x32xf32>, vector<8x32xf32> -> vector<8x32xf32>
    %c0_3 = arith.constant 0 : index
    %c0_4 = arith.constant 0 : index
    %3 = vector.load %arg3[%c0_3, %c0_4] : memref<1x32xf32, #tpu.memory_space<vmem>>, vector<1x32xf32>
    %4 = vector.broadcast %3 : vector<1x32xf32> to vector<8x32xf32>
    %5 = arith.addf %2, %4 : vector<8x32xf32>
    %cst_5 = arith.constant 0.000000e+00 : f32
    %6 = vector.broadcast %cst_5 : f32 to vector<8x32xf32>
    %7 = arith.maximumf %5, %6 : vector<8x32xf32>
    %c0_6 = arith.constant 0 : index
    %c0_7 = arith.constant 0 : index
    %8 = vector.load %arg4[%c0_6, %c0_7] : memref<32x128xf32, #tpu.memory_space<vmem>>, vector<32x128xf32>
    %cst_8 = arith.constant dense<0.000000e+00> : vector<8x128xf32>
    %9 = tpu.matmul %7, %8, %cst_8 {dimension_numbers = #tpu.dot_dimension_numbers<[1], [0], [0], [1], [0, 0, 1, 1], [], []>} : vector<8x32xf32>, vector<32x128xf32>, vector<8x128xf32> -> vector<8x128xf32>
    %c0_9 = arith.constant 0 : index
    %c0_10 = arith.constant 0 : index
    %10 = vector.load %arg5[%c0_9, %c0_10] : memref<1x128xf32, #tpu.memory_space<vmem>>, vector<1x128xf32>
    %11 = vector.broadcast %10 : vector<1x128xf32> to vector<8x128xf32>
    %12 = arith.addf %9, %11 : vector<8x128xf32>
    %c0_11 = arith.constant 0 : index
    %c0_12 = arith.constant 0 : index
    %13 = vector.load %arg6[%c0_11, %c0_12] : memref<8x128xf32, #tpu.memory_space<vmem>>, vector<8x128xf32>
    tpu.vector_store %arg6[%c0_11, %c0_12], %12 {strides = array<i32>} : memref<8x128xf32, #tpu.memory_space<vmem>>, vector<8x128xf32>,
    return
  }
  func.func @transform_0(%arg0: i32) -> (i32, i32) {
    %c0_i32 = arith.constant 0 : i32
    %c0_i32_0 = arith.constant 0 : i32
    return %arg0, %c0_i32 : i32, i32
  }
  func.func @transform_1(%arg0: i32) -> (i32, i32) {
    %c0_i32 = arith.constant 0 : i32
    %c0_i32_0 = arith.constant 0 : i32
    %c0_i32_1 = arith.constant 0 : i32
    return %c0_i32, %c0_i32_0 : i32, i32
  }
  func.func @transform_2(%arg0: i32) -> (i32, i32) {
    %c0_i32 = arith.constant 0 : i32
    %c0_i32_0 = arith.constant 0 : i32
    %c0_i32_1 = arith.constant 0 : i32
    return %c0_i32, %c0_i32_0 : i32, i32
  }
  func.func @transform_3(%arg0: i32) -> (i32, i32) {
    %c0_i32 = arith.constant 0 : i32
    %c0_i32_0 = arith.constant 0 : i32
    %c0_i32_1 = arith.constant 0 : i32
    return %c0_i32, %c0_i32_0 : i32, i32
  }
  func.func @transform_4(%arg0: i32) -> (i32, i32) {
    %c0_i32 = arith.constant 0 : i32
    %c0_i32_0 = arith.constant 0 : i32
    %c0_i32_1 = arith.constant 0 : i32
    return %c0_i32, %c0_i32_0 : i32, i32
  }
  func.func @transform_5(%arg0: i32) -> (i32, i32) {
    %c0_i32 = arith.constant 0 : i32
    %c0_i32_0 = arith.constant 0 : i32
    return %arg0, %c0_i32 : i32, i32
  }
}

</mosaic_0001>

<bundles_post_ra>
// kernel: linear_qnet_forward.1
= control target key start
LH: loop header
LB: loop body
LE: loop exit
PB: predicated region body
PF: predicated region fallthrough
CT: control target
= control target key end

     0   :  { %10 = vsyncpa [#allocation3], 0  ;;  %s450_s0 = inlined_call_operand.hbm [shape: f32[8,11], index: 0, kind: input, shape index: {}]   ;;  %s451_s1 = inlined_call_operand.hbm [shape: f32[11,32], index: 1, kind: input, shape index: {}]   ;;  %s452_s2 = inlined_call_operand.vmem [shape: f32[1,32], index: 2, kind: input, shape index: {}]   ;;  %s453_s3 = inlined_call_operand.hbm [shape: f32[32,128], index: 3, kind: input, shape index: {}]   ;;  %s454_s4 = inlined_call_operand.vmem [shape: f32[1,128], index: 4, kind: input, shape index: {}]   ;;  %s455_s5 = inlined_call_operand.vmem [shape: f32[8,128], index: 5, kind: output, shape index: {}]  }
   0x1   :  { %11 = vsyncpa [#allocation5], 0  ;;  %s360_s18 = smov [#allocation4]   ;;  %s290_s22 = scalar_lea.hbm %s451_s1, 256 }
   0x2   :  { %s27_s19 = sshll.u32 %s360_s18, 4  ;;  %p291_p0 = scmp.ne.s32.totalorder %s451_s1, %s290_s22  ;;  %s28_s19 = int_to_ptr.vmem [resolvable:$true] %s27_s19 }
   0x3   :  { %p294_p1 = scmp.lt.u32.totalorder %s290_s22, %s451_s1 }
   0x5   :  { %p296_p2 = pnand %p294_p1, %p291_p0 }
   0x7   :  { %299 = shalt.err (!%p296_p2)
}
   0x8   :  { %s300_s27 = scalar_lea.vmem %s28_s19, 256  ;;  %p305_p4 = scmp.lt.s32.totalorder %s28_s19, %s28_s19 }
   0x9   :  { %p301_p3 = scmp.ne.s32.totalorder %s28_s19, %s300_s27  ;;  %p306_p5 = scmp.lt.s32.totalorder %s300_s27, %s300_s27 }
   0xb   :  { %p307_p6 = por %p306_p5, %p305_p4 }
   0xd   :  { %p308_p7 = pnand %p307_p6, %p301_p3 }
   0xf   :  { %311 = shalt.err (!%p308_p7)
}
  0x10   :  { %s361_s28 = smov 128   ;;  %s362_s29 = smov 8  }
  0x11   :  { %33 = dma.hbm_to_vmem [thread:$0]  %s451_s1, 256, %s28_s19, [#allocation5], %s361_s28, %s361_s28, %s362_s29  }
  0x12   :  { %s363_s7 = smov [#allocation2]   ;;  %s364_s9 = smov [#allocation6]  }
  0x13   :  { %s18_s8 = sshll.u32 %s363_s7, 4  ;;  %s41_s10 = sshll.u32 %s364_s9, 4  ;;  %s19_s8 = int_to_ptr.vmem [resolvable:$true] %s18_s8  ;;  %s42_s10 = int_to_ptr.vmem [resolvable:$true] %s41_s10 }
  0x14   :  { %s312_s13 = scalar_lea.hbm %s450_s0, 128 }
  0x15   :  { %p313_p8 = scmp.ne.s32.totalorder %s450_s0, %s312_s13  ;;  %p316_p9 = scmp.lt.u32.totalorder %s312_s13, %s450_s0 }
  0x17   :  { %p318_p10 = pnand %p316_p9, %p313_p8 }
  0x19   :  { %321 = shalt.err (!%p318_p10)
}
  0x1a   :  { %s322_s1 = scalar_lea.vmem %s19_s8, 128  ;;  %p327_p12 = scmp.lt.s32.totalorder %s19_s8, %s19_s8 }
  0x1b   :  { %p323_p11 = scmp.ne.s32.totalorder %s19_s8, %s322_s1  ;;  %p328_p13 = scmp.lt.s32.totalorder %s322_s1, %s322_s1 }
  0x1d   :  { %p329_p0 = por %p328_p13, %p327_p12 }
  0x1f   :  { %p330_p1 = pnand %p329_p0, %p323_p11 }
  0x21   :  { %333 = shalt.err (!%p330_p1)
}
  0x22   :  { %21 = dma.hbm_to_vmem [thread:$0]  %s450_s0, 128, %s19_s8, [#allocation3]  }
  0x23   :  { %s334_s22 = scalar_lea.hbm %s453_s3, 512 }
  0x24   :  { %p335_p2 = scmp.ne.s32.totalorder %s453_s3, %s334_s22  ;;  %p338_p3 = scmp.lt.u32.totalorder %s334_s22, %s453_s3 }
  0x26   :  { %p340_p4 = pnand %p338_p3, %p335_p2 }
  0x28   :  { %343 = shalt.err (!%p340_p4)
}
  0x29   :  { %s344_s27 = scalar_lea.vmem %s42_s10, 512  ;;  %p349_p6 = scmp.lt.s32.totalorder %s42_s10, %s42_s10 }
  0x2a   :  { %p345_p5 = scmp.ne.s32.totalorder %s42_s10, %s344_s27  ;;  %p350_p7 = scmp.lt.s32.totalorder %s344_s27, %s344_s27 }
  0x2c   :  { %p351_p8 = por %p350_p7, %p349_p6 }
  0x2e   :  { %p352_p9 = pnand %p351_p8, %p345_p5 }
  0x30   :  { %355 = shalt.err (!%p352_p9)
}
  0x31   :  { %47 = dma.hbm_to_vmem [thread:$0]  %s453_s3, 512, %s42_s10, [#allocation5], %s361_s28, %s361_s28, %s362_s29  }
  0x32   :  { %356 = dma.done.wait [#allocation3], 128  }
  0x33   :  { %357 = vsyncadd [#allocation3], 4294967168 }
  0x34   :  { %358 = dma.done.wait [#allocation5], 768  }
  0x35   :  { %359 = vsyncadd [#allocation5], 4294966528  ;;  %v365_v0 = vmov 0.0|0.0   ;;  %vm366_vm0 = vmmov 0   ;;  %v367_v1 = vmov 0.0   ;;  %vm73_vm1 = vcmask 1042432  }
  0x36   :  { %271 = vmatprep.subr.bf16.mxu0 %v365_v0  ;;  %275 = vmatprep.subr.bf16.mxu1 %v365_v0  ;;  %v60_v2 = vld [vmem:[#allocation4] sm:$0xff]  ;;  %v61_v3 = vld [vmem:[#allocation4 + $0x8] sm:$0x7]  ;;  %vm368_vm2 = vmmov 1   ;;  %v148_v5 = vld [vmem:[#allocation6] sm:$0xff]  ;;  %vm69_vm4 = vcmask 89088  }
  0x37   :  { %257 = vmatprep.mubr.msk.f32.mxu0 %vm366_vm0, %v367_v1  ;;  %268 = vmatprep.mubr.msk.f32.mxu1 %vm366_vm0, %v367_v1  ;;  %vm273_vm3 = vmpackc.low %vm73_vm1, %vm368_vm2  ;;  %v272_v4 = vpack.c.bf16 %v61_v3, %v60_v2  ;;  %v149_v6 = vld [vmem:[#allocation6 + $0x8] sm:$0xff]  ;;  %v150_v9 = vld [vmem:[#allocation6 + $0x10] sm:$0xff]  ;;  %vm159_vm5 = vcmask 261120  }
  0x38   :  { %v276_v7 = vpack.c.bf16 %v149_v6, %v148_v5  ;;  %v59_v8 = vld [vmem:[#allocation2] sm:$0xff]  ;;  %v151_v10 = vld [vmem:[#allocation6 + $0x18] sm:$0xff] }
  0x39   :  { %274 = vmatpush3.bf16.msk.msra.mxu0 %vm273_vm3, %v272_v4  ;;  %v279_v11 = vpack.c.bf16 %v151_v10, %v150_v9  ;;  %v240_v12 = vld [vmem:[%s452_s2] ss:$0 sm:$0xff] }
  0x3a   :  { %277 = vmatpush3.bf16.msra.mxu1 %v276_v7  ;;  %v243_v17 = vld [vmem:[%s454_s4] ss:$0 sm:$0xff] }
  0x3b   :  { %278 = vmatprep.subr.bf16.mxu1 %v365_v0 }
  0x3c   :  { %258 = vmatmul.mubr.msk.f32.vlgmr.msra.gmra.mrb[0].mxu0 %vm69_vm4, %v59_v8 }
  0x3e   :  { %280 = vmatpush3.bf16.msra.mxu1 %v279_v11 }
 0x10f   :  { %v143_v13 = vpop.f32.mrb[0].mxu0 }
 0x110   :  { %v144_v14 = vadd.f32 %v240_v12, %v143_v13  ;;  %v259_v15 = vpop.f32.mrb[1].mxu0 }
 0x112   :  { %v147_v16 = vmax.f32 %v144_v14, 0.0 }
 0x114   :  { %269 = vmatmul.mubr.msk.f32.vlgmr.msra.gmra.mrb[0].mxu1 %vm159_vm5, %v147_v16 }
 0x1e7   :  { %v229_v18 = vpop.f32.mrb[0].mxu1 }
 0x1e8   :  { %v230_v19 = vadd.f32 %v243_v17, %v229_v18  ;;  %v270_v20 = vpop.f32.mrb[1].mxu1 }
 0x1ea   :  { %233 = vst [vmem:[%s455_s5] sm:$0xff] %v230_v19 }
 0x1eb   :  { %238 = vsyncpa [#allocation3], 1 }
 0x1ec   :  { %239 = vsyncpa [#allocation5], 1 }

</bundles_post_ra>
